<compile_context>
chip_gen: v5e
topology: v5e:2x2
jax: 0.10.0
libtpu: 0.0.40
codegen_flags: <defaults>
</compile_context>

<pallas_src>
import functools

import jax
import jax.numpy as jnp
from jax.experimental import pallas as pl
from jax.experimental.pallas import tpu as pltpu


def _pixel_unshuffle_kernel(x_ref, csel_ref, o_ref, *, r, planes, out_h):
    """One grid step: de-interleave `planes` planes over one W_blk lane block.

    x_ref   : (planes*H, W_blk)          input rows (plane-major), one W block.
    csel_ref: (r, W_blk, owb)            one-hot lane-selection matrices
                                         (constant index_map -> VMEM resident).
    o_ref   : (planes, r*r, out_h, owb)  output block.
    """
    n_rows = planes * out_h
    cdtype = csel_ref.dtype
    prec = (jax.lax.Precision.HIGHEST if cdtype == jnp.float32
            else jax.lax.Precision.DEFAULT)

    for dr in range(r):
        # Row (sublane) de-interleave: strided ref read, no compute.
        # Row m = q*out_h + oh of `rows` is x[plane q, oh*r + dr, :].
        rows = x_ref[pl.ds(dr, n_rows, stride=r), :].astype(cdtype)
        for dc in range(r):
            # Lane (column) de-interleave: exact one-hot selection on the MXU.
            # K is capped at W_blk = 128*r by the W tiling.
            blk = jnp.dot(rows, csel_ref[dc],
                          preferred_element_type=jnp.float32,
                          precision=prec)                    # (n_rows, owb)
            blk = blk.astype(o_ref.dtype)
            s = dr * r + dc
            for q in range(planes):
                o_ref[q, s, :, :] = blk[q * out_h:(q + 1) * out_h, :]


def _choose_planes(num_planes, H, out_h, plane_block_bytes, r, w_blocks,
                   max_block_bytes=2 << 20, max_stores=256, min_grid=8):
    """Pick planes-per-block: sublane-legal, ~2 MiB input block, bounded
    store unrolling, prefer a grid of >= `min_grid` steps for pipelining and
    multi-TensorCore sharding, and prefer 8-aligned per-plane value slices."""
    divisors = [d for d in range(1, num_planes + 1) if num_planes % d == 0]
    legal = [d for d in divisors if (d * H) % 8 == 0 or d == num_planes]

    def fits(d, aligned_only):
        ok = (d * plane_block_bytes <= max_block_bytes
              and d * r * r <= max_stores)
        if aligned_only:
            ok = ok and (d == 1 or out_h % 8 == 0)
        return ok

    for aligned_only in (True, False):
        capped = [d for d in legal if fits(d, aligned_only)]
        if capped:
            long_grid = [d for d in capped
                         if (num_planes // d) * w_blocks >= min_grid]
            return max(long_grid) if long_grid else max(capped)
    return min(legal)


def pixel_unshuffle(x, downscale_factor):
    r = int(downscale_factor)
    B, C, H, W = x.shape
    assert H % r == 0 and W % r == 0, (
        "Height and Width must be divisible by downscale factor")
    if r == 1:
        return x
    out_h, out_w = H // r, W // r
    num_planes = B * C

    # Compute dtype for the one-hot selection matmul; f32/bf16 stay native.
    if x.dtype in (jnp.float32, jnp.bfloat16):
        cdtype = jnp.dtype(x.dtype)
    else:
        cdtype = jnp.dtype(jnp.float32)

    # Lane (W) tiling: 128-wide output blocks -> unmasked dense stores, tiny
    # resident csel, matmul K capped at 128*r.  Fall back to the full width
    # when out_w is not a multiple of 128.
    owb = 128 if out_w % 128 == 0 else out_w
    w_blk = owb * r
    w_blocks = out_w // owb

    # One-hot lane-selection matrices for one W block (identical for every
    # block because w-block offsets are multiples of r).  Built once.
    j = jnp.arange(w_blk, dtype=jnp.int32)[None, :, None]
    k = jnp.arange(owb, dtype=jnp.int32)[None, None, :]
    dc = jnp.arange(r, dtype=jnp.int32)[:, None, None]
    csel = (j == k * r + dc).astype(cdtype)                   # (r, w_blk, owb)

    itemsize = jnp.dtype(x.dtype).itemsize
    plane_block_bytes = H * w_blk * itemsize
    planes = _choose_planes(num_planes, H, out_h, plane_block_bytes, r,
                            w_blocks)
    grid = (num_planes // planes, w_blocks)

    # Contiguous merges/splits only -> no data movement in the wrapper.
    x2 = x.reshape(num_planes * H, W)
    out_shape = jax.ShapeDtypeStruct((num_planes, r * r, out_h, out_w),
                                     x.dtype)

    in_block_bytes = planes * H * w_blk * itemsize
    out_block_bytes = planes * r * r * out_h * owb * itemsize
    csel_bytes = r * w_blk * owb * cdtype.itemsize
    vmem_limit = 2 * (in_block_bytes + out_block_bytes) + 2 * csel_bytes
    vmem_limit = int(min(max(vmem_limit + (4 << 20), 16 << 20), 56 << 20))
    # TODO(synk): blocks forced above ~56 MiB (only when sublane legality
    # forces planes == num_planes on huge odd-H inputs) may still OOM on v7x.

    flops = 2 * num_planes * H * W * w_blk          # one-hot MACs * 2
    bytes_accessed = 2 * num_planes * H * W * itemsize + csel_bytes

    kernel = functools.partial(_pixel_unshuffle_kernel,
                               r=r, planes=planes, out_h=out_h)

    out = pl.pallas_call(
        kernel,
        out_shape=out_shape,
        grid_spec=pltpu.PrefetchScalarGridSpec(
            num_scalar_prefetch=0,
            grid=grid,
            in_specs=[
                pl.BlockSpec((planes * H, w_blk), lambda i, j: (i, j)),
                # Constant index_map: selection matrices stay resident in VMEM.
                pl.BlockSpec((r, w_blk, owb), lambda i, j: (0, 0, 0)),
            ],
            out_specs=pl.BlockSpec((planes, r * r, out_h, owb),
                                   lambda i, j: (i, 0, 0, j)),
        ),
        compiler_params=pltpu.CompilerParams(
            dimension_semantics=("parallel", "parallel"),
            vmem_limit_bytes=vmem_limit),
        cost_estimate=pl.CostEstimate(flops=flops, transcendentals=0,
                                      bytes_accessed=bytes_accessed),
    )(x2, csel)

    return out.reshape(B, C * r * r, out_h, out_w)


def _reference(x, r):
    # Pure-JAX reference (same math as the PyTorch view/permute/view).
    B, C, H, W = x.shape
    ref = x.reshape(B, C, H // r, r, W // r, r)
    ref = jnp.transpose(ref, (0, 1, 3, 5, 2, 4))
    return ref.reshape(B, C * r * r, H // r, W // r)


if __name__ == "__main__":
    key = jax.random.PRNGKey(0)
    k1, k2, k3 = jax.random.split(key, 3)

    # Case 1: module-scale small shapes (full-width fallback path, f32).
    x1 = jax.random.normal(k1, (2, 4, 16, 16), dtype=jnp.float32)
    o1 = jax.block_until_ready(pixel_unshuffle(x1, 2))
    r1 = _reference(x1, 2)
    assert o1.shape == r1.shape and o1.dtype == x1.dtype
    assert jnp.allclose(o1, r1, atol=1e-6, rtol=1e-6), "case1 mismatch"

    # Case 2: lane-tiled path (out_w multiple of 128), bf16, r=4.
    x2 = jax.random.normal(k2, (1, 3, 32, 512), dtype=jnp.bfloat16)
    o2 = jax.block_until_ready(pixel_unshuffle(x2, 4))
    r2 = _reference(x2, 4)
    assert o2.shape == r2.shape and o2.dtype == x2.dtype
    assert jnp.allclose(o2.astype(jnp.float32), r2.astype(jnp.float32),
                        atol=1e-6, rtol=1e-6), "case2 mismatch"

    # Case 3: 2-D grid (plane groups x W blocks), planes > 1 per block.
    x3 = jax.random.normal(k3, (2, 8, 16, 512), dtype=jnp.float32)
    o3 = jax.block_until_ready(pixel_unshuffle(x3, 2))
    r3 = _reference(x3, 2)
    assert o3.shape == r3.shape and o3.dtype == x3.dtype
    assert jnp.allclose(o3, r3, atol=1e-6, rtol=1e-6), "case3 mismatch"

    print("KERNEL_OK")
</pallas_src>

<mosaic_0001>
module attributes {stable_mosaic.version = 11 : i64} {
  func.func @_pixel_unshuffle_kernel(%arg0: i32, %arg1: i32, %arg2: memref<16x16xf32, #tpu.memory_space<vmem>>, %arg3: memref<2x16x8xf32, #tpu.memory_space<vmem>>, %arg4: memref<1x4x8x8xf32, #tpu.memory_space<vmem>>) attributes {dimension_semantics = [#tpu.dimension_semantics<parallel>, #tpu.dimension_semantics<parallel>], iteration_bounds = array<i64: 8, 1>, scalar_prefetch = 0 : i64, scratch_operands = 0 : i64, tpu.core_type = #tpu.core_type<tc>, window_params = [{transform_indices = @transform_0, window_bounds = array<i64: 16, 16>}, {pipeline_mode = #tpu.pipeline_mode<synchronous>, transform_indices = @transform_1, window_bounds = array<i64: 2, 16, 8>}, {transform_indices = @transform_2, window_bounds = array<i64: 1, 4, 8, 8>}]} {
    %c0 = arith.constant 0 : index
    %c0_0 = arith.constant 0 : index
    %0 = tpu.strided_load %arg2[%c0, %c0_0] {strides = array<i32: 2, 1>} : memref<16x16xf32, #tpu.memory_space<vmem>>, vector<8x16xf32>
    %c0_1 = arith.constant 0 : index
    %c0_2 = arith.constant 0 : index
    %c0_3 = arith.constant 0 : index
    %1 = vector.load %arg3[%c0_1, %c0_2, %c0_3] : memref<2x16x8xf32, #tpu.memory_space<vmem>>, vector<1x16x8xf32>
    %2 = vector.shape_cast %1 : vector<1x16x8xf32> to vector<16x8xf32>
    %cst = arith.constant dense<0.000000e+00> : vector<8x8xf32>
    %3 = tpu.matmul %0, %2, %cst {dimension_numbers = #tpu.dot_dimension_numbers<[1], [0], [0], [1], [0, 0, 1, 1], [], []>, precision = #tpu.contract_precision<fp32>} : vector<8x16xf32>, vector<16x8xf32>, vector<8x8xf32> -> vector<8x8xf32>
    %c0_4 = arith.constant 0 : index
    %c0_5 = arith.constant 0 : index
    %c0_6 = arith.constant 0 : index
    %c0_7 = arith.constant 0 : index
    %4 = vector.load %arg4[%c0_4, %c0_5, %c0_6, %c0_7] : memref<1x4x8x8xf32, #tpu.memory_space<vmem>>, vector<1x1x8x8xf32>
    %5 = vector.shape_cast %4 : vector<1x1x8x8xf32> to vector<8x8xf32>
    %6 = vector.shape_cast %3 : vector<8x8xf32> to vector<1x1x8x8xf32>
    tpu.vector_store %arg4[%c0_4, %c0_5, %c0_6, %c0_7], %6 {strides = array<i32>} : memref<1x4x8x8xf32, #tpu.memory_space<vmem>>, vector<1x1x8x8xf32>,
    %c1 = arith.constant 1 : index
    %c0_8 = arith.constant 0 : index
    %c0_9 = arith.constant 0 : index
    %7 = vector.load %arg3[%c1, %c0_8, %c0_9] : memref<2x16x8xf32, #tpu.memory_space<vmem>>, vector<1x16x8xf32>
    %8 = vector.shape_cast %7 : vector<1x16x8xf32> to vector<16x8xf32>
    %cst_10 = arith.constant dense<0.000000e+00> : vector<8x8xf32>
    %9 = tpu.matmul %0, %8, %cst_10 {dimension_numbers = #tpu.dot_dimension_numbers<[1], [0], [0], [1], [0, 0, 1, 1], [], []>, precision = #tpu.contract_precision<fp32>} : vector<8x16xf32>, vector<16x8xf32>, vector<8x8xf32> -> vector<8x8xf32>
    %c0_11 = arith.constant 0 : index
    %c1_12 = arith.constant 1 : index
    %c0_13 = arith.constant 0 : index
    %c0_14 = arith.constant 0 : index
    %10 = vector.load %arg4[%c0_11, %c1_12, %c0_13, %c0_14] : memref<1x4x8x8xf32, #tpu.memory_space<vmem>>, vector<1x1x8x8xf32>
    %11 = vector.shape_cast %10 : vector<1x1x8x8xf32> to vector<8x8xf32>
    %12 = vector.shape_cast %9 : vector<8x8xf32> to vector<1x1x8x8xf32>
    tpu.vector_store %arg4[%c0_11, %c1_12, %c0_13, %c0_14], %12 {strides = array<i32>} : memref<1x4x8x8xf32, #tpu.memory_space<vmem>>, vector<1x1x8x8xf32>,
    %c1_15 = arith.constant 1 : index
    %c0_16 = arith.constant 0 : index
    %13 = tpu.strided_load %arg2[%c1_15, %c0_16] {strides = array<i32: 2, 1>} : memref<16x16xf32, #tpu.memory_space<vmem>>, vector<8x16xf32>
    %c0_17 = arith.constant 0 : index
    %c0_18 = arith.constant 0 : index
    %c0_19 = arith.constant 0 : index
    %14 = vector.load %arg3[%c0_17, %c0_18, %c0_19] : memref<2x16x8xf32, #tpu.memory_space<vmem>>, vector<1x16x8xf32>
    %15 = vector.shape_cast %14 : vector<1x16x8xf32> to vector<16x8xf32>
    %cst_20 = arith.constant dense<0.000000e+00> : vector<8x8xf32>
    %16 = tpu.matmul %13, %15, %cst_20 {dimension_numbers = #tpu.dot_dimension_numbers<[1], [0], [0], [1], [0, 0, 1, 1], [], []>, precision = #tpu.contract_precision<fp32>} : vector<8x16xf32>, vector<16x8xf32>, vector<8x8xf32> -> vector<8x8xf32>
    %c0_21 = arith.constant 0 : index
    %c2 = arith.constant 2 : index
    %c0_22 = arith.constant 0 : index
    %c0_23 = arith.constant 0 : index
    %17 = vector.load %arg4[%c0_21, %c2, %c0_22, %c0_23] : memref<1x4x8x8xf32, #tpu.memory_space<vmem>>, vector<1x1x8x8xf32>
    %18 = vector.shape_cast %17 : vector<1x1x8x8xf32> to vector<8x8xf32>
    %19 = vector.shape_cast %16 : vector<8x8xf32> to vector<1x1x8x8xf32>
    tpu.vector_store %arg4[%c0_21, %c2, %c0_22, %c0_23], %19 {strides = array<i32>} : memref<1x4x8x8xf32, #tpu.memory_space<vmem>>, vector<1x1x8x8xf32>,
    %c1_24 = arith.constant 1 : index
    %c0_25 = arith.constant 0 : index
    %c0_26 = arith.constant 0 : index
    %20 = vector.load %arg3[%c1_24, %c0_25, %c0_26] : memref<2x16x8xf32, #tpu.memory_space<vmem>>, vector<1x16x8xf32>
    %21 = vector.shape_cast %20 : vector<1x16x8xf32> to vector<16x8xf32>
    %cst_27 = arith.constant dense<0.000000e+00> : vector<8x8xf32>
    %22 = tpu.matmul %13, %21, %cst_27 {dimension_numbers = #tpu.dot_dimension_numbers<[1], [0], [0], [1], [0, 0, 1, 1], [], []>, precision = #tpu.contract_precision<fp32>} : vector<8x16xf32>, vector<16x8xf32>, vector<8x8xf32> -> vector<8x8xf32>
    %c0_28 = arith.constant 0 : index
    %c3 = arith.constant 3 : index
    %c0_29 = arith.constant 0 : index
    %c0_30 = arith.constant 0 : index
    %23 = vector.load %arg4[%c0_28, %c3, %c0_29, %c0_30] : memref<1x4x8x8xf32, #tpu.memory_space<vmem>>, vector<1x1x8x8xf32>
    %24 = vector.shape_cast %23 : vector<1x1x8x8xf32> to vector<8x8xf32>
    %25 = vector.shape_cast %22 : vector<8x8xf32> to vector<1x1x8x8xf32>
    tpu.vector_store %arg4[%c0_28, %c3, %c0_29, %c0_30], %25 {strides = array<i32>} : memref<1x4x8x8xf32, #tpu.memory_space<vmem>>, vector<1x1x8x8xf32>,
    return
  }
  func.func @transform_0(%arg0: i32, %arg1: i32) -> (i32, i32) {
    %c0_i32 = arith.constant 0 : i32
    return %arg0, %arg1 : i32, i32
  }
  func.func @transform_1(%arg0: i32, %arg1: i32) -> (i32, i32, i32) {
    %c0_i32 = arith.constant 0 : i32
    %c0_i32_0 = arith.constant 0 : i32
    %c0_i32_1 = arith.constant 0 : i32
    %c0_i32_2 = arith.constant 0 : i32
    return %c0_i32, %c0_i32_0, %c0_i32_1 : i32, i32, i32
  }
  func.func @transform_2(%arg0: i32, %arg1: i32) -> (i32, i32, i32, i32) {
    %c0_i32 = arith.constant 0 : i32
    %c0_i32_0 = arith.constant 0 : i32
    %c0_i32_1 = arith.constant 0 : i32
    return %arg0, %c0_i32, %c0_i32_0, %arg1 : i32, i32, i32, i32
  }
}

</mosaic_0001>

<bundles_post_ra>
// kernel: tpu_custom_call.1
= control target key start
LH: loop header
LB: loop body
LE: loop exit
PB: predicated region body
PF: predicated region fallthrough
CT: control target
= control target key end

     0   :  { %7 = vsyncpa [#allocation3], 0  ;;  %s1297_s0 = inlined_call_operand.vmem [shape: f32[128,16], index: 0, kind: input, shape index: {}]   ;;  %s1298_s1 = inlined_call_operand.vmem [shape: f32[2,16,8], index: 1, kind: input, shape index: {}]   ;;  %s1299_s2 = inlined_call_operand.hbm [shape: f32[8,4,8,8], index: 2, kind: output, shape index: {}]  }
   0x1   :  { %9 = vsyncpa [#allocation3 + $0x1], 0  ;;  %s1100_s9 = smov 0   ;;  %s1102_s10 = smov 0  }
   0x2   :  { %s1104_s11 = smov 0   ;;  %s1106_s12 = smov 0  }
   0x3   :  { %s1108_s13 = smov 0   ;;  %s1110_s14 = smov 0  }
   0x4 LB: > { %s924_s15 = sadd.s32 4294967295, %s1081_s14   ;;  %s925_s16 = sadd.s32 4294967294, %s1081_s14   ;;  %s1081_s14 = sphi %s1110_s14, %s15_s14   ;;  %s1077_s13 = sphi %s1108_s13, %s1306_s13   ;;  %s1073_s12 = sphi %s1106_s12, %s1305_s12   ;;  %s1069_s11 = sphi %s1104_s11, %s1304_s11   ;;  %s1065_s10 = sphi %s1102_s10, %s1303_s10   ;;  %s1061_s9 = sphi %s1100_s9, %s1302_s9  }
   0x5   : > { %s27_s17 = sadd.s32 1, %s1077_s13  ;;  %s85_s18 = sadd.s32 1, %s1069_s11 }
   0x6   : > { %p29_p0 = scmp.ge.s32.totalorder %s27_s17, 8  ;;  %p95_p1 = scmp.ne.s32.totalorder %s1069_s11, %s1065_s10 }
   0x7   : > { %p96_p2 = scmp.eq.s32.totalorder %s924_s15, 7  ;;  %p101_p3 = scmp.ne.s32.totalorder %s1065_s10, %s1061_s9 }
   0x8   : > { %s1308_s17 = smov (%p29_p0, %s27_s17), 0  ;;  %p102_p5 = scmp.eq.s32.totalorder %s925_s16, 7 }
   0x9   : > { %p1140_p4 = por %p96_p2, %p95_p1  ;;  %s80_s20 = ssub.s32 %s1077_s13, %s1308_s17 }
   0xa   : > { %p928_p6 = scmp.ge.s32.totalorder %s1081_s14, 1  ;;  %p83_p7 = scmp.eq.s32.totalorder %s80_s20, 0 }
   0xb   : > { %p1147_p8 = por %p102_p5, %p101_p3  ;;  %p135_p9 = scmp.lt.s32.totalorder %s1081_s14, 9 }
   0xc   : > { %s1153_s22 = scalar_select %p83_p7, %s1069_s11, %s85_s18  }
   0xd   : > { %p136_p10 = pnand %p928_p6, %p135_p9 }
   0xe   : > { %s930_s27 = sshll.u32 (!%p136_p10), %s1073_s12, 1  ;;  %s157_s8 = sand.u32 (!%p136_p10), 1, %s1065_s10  }
   0xf   : > { %139 = sbr.rel (%p136_p10) target bundleno = 214 (0xd6), region = 28  ;;  %p161_p11 = scmp.lt.s32.totalorder (!%p136_p10), %s930_s27, 15 }
  0x10   : > { %s929_s15 = sshll.u32 (!%p136_p10), %s157_s8, 5  ;;  %s945_s18 = sshll.u32 (!%p136_p10), %s1073_s12, 5 }
  0x11   : > { %s1248_s16 = scalar_lea.vmem (!%p136_p10), [#allocation2], %s929_s15  ;;  %s845_s24 = scalar_lea.hbm (!%p136_p10), %s1299_s2, %s945_s18 }
  0x12   : > { %s846_s25 = sshll.u32 (!%p136_p10), %s1248_s16, 4  ;;  %s848_s26 = sshll.u32 (!%p136_p10), %s845_s24, 4  ;;  %s847_s25 = int_to_ptr.vmem [resolvable:$true] %s846_s25  ;;  %s849_s26 = int_to_ptr.hbm [resolvable:$true] %s848_s26 }
  0x13   : > { %s833_s12 = scalar_lea.sflag (!%p136_p10), [#allocation3], %s157_s8  ;;  %s1023_s3 = scalar_lea.hbm (!%p136_p10), %s1299_s2, 256 }
  0x14   : > { %v171_v0 = vld [vmem:[%s1298_s1 + $0x8] sm:$0xff]  ;;  %v170_v1 = vld [vmem:[%s1298_s1] sm:$0xff]  ;;  %v933_v2 = vld [vmem:[%s1298_s1 + $0x18] sm:$0xff]  ;;  %s1310_s27 = smov (!%p161_p11, %s930_s27), 15  ;;  %vm172_vm0 = vcmask 130048   ;;  %vm335_vm1 = vcmask 64512  }
  0x15   : > { %v1165_v3 = vand.u32 4294901760, %v171_v0  ;;  %v1167_v4 = vand.u32 4294901760, %v170_v1  ;;  %v1169_v5 = vand.u32 4294901760, %v933_v2  ;;  %v932_v6 = vld [vmem:[%s1298_s1 + $0x10] sm:$0xff]  ;;  %s931_s4 = sshll.u32 %s1310_s27, 3  ;;  %s1017_s27 = sshra.s32 %s849_s26, 4  ;;  %s1018_s27 = int_to_ptr.hbm [resolvable:$true] %s1017_s27 }
  0x16   : > { %v1174_v7 = vand.u32 4294901760, %v932_v6  ;;  %s1197_s7 = scalar_lea.vmem %s1297_s0, %s931_s4  ;;  %s1019_s28 = scalar_lea.hbm %s1018_s27, 32 }
  0x17   : > { %v218_v8 = vsub.f32 %v171_v0, %v1165_v3  ;;  %v224_v9 = vsub.f32 %v170_v1, %v1167_v4  ;;  %275 = vmatpush.msra.mxu3 %v1165_v3  ;;  %191 = vmatpush.msra.mxu0 %v1165_v3  ;;  %v1181_v10 = vsub.f32 %v933_v2, %v1169_v5  ;;  %v169_v16 = vld [vmem:[%s1197_s7] ss:$2 sm:$0xff]  ;;  %v935_v31 = vld [vmem:[%s1197_s7 + $0x1] ss:$2 sm:$0xff]  ;;  %p1020_p12 = scmp.ne.s32.totalorder %s1018_s27, %s1019_s28  ;;  %p1024_p1 = scmp.lt.s32.totalorder %s1018_s27, %s1299_s2 }
  0x18   : > { %v1184_v11 = vsub.f32 %v932_v6, %v1174_v7  ;;  %v174_v20 = vsel %vm172_vm0, %v169_v16, 0  ;;  %v506_v32 = vsel %vm172_vm0, %v935_v31, 0  ;;  %p1025_p2 = scmp.lt.s32.totalorder %s1023_s3, %s1019_s28 }
  0x19   : > { %250 = vmatpush.msra.mxu2 %v218_v8  ;;  %v1186_v12 = vand.u32 4294901760, %v218_v8  ;;  %277 = vmatpush.msra.mxu3 %v1167_v4  ;;  %v1189_v13 = vand.u32 4294901760, %v224_v9  ;;  %v1192_v14 = vand.u32 4294901760, %v1181_v10  ;;  %v194_v22 = vand.u32 4294901760, %v174_v20  ;;  %p1021_p13 = pnand %p1020_p12, %p1140_p4 }
  0x1a   : > { %193 = vmatpush.msra.mxu0 %v1167_v4  ;;  %v1201_v15 = vand.u32 4294901760, %v1184_v11  ;;  %v526_v33 = vand.u32 4294901760, %v506_v32  ;;  %p1026_p3 = por %p1025_p2, %p1024_p1 }
  0x1b   : > { %253 = vmatpush.msra.mxu2 %v224_v9  ;;  %v220_v17 = vsub.f32 %v218_v8, %v1186_v12  ;;  %v226_v18 = vsub.f32 %v224_v9, %v1189_v13  ;;  %v384_v19 = vsub.f32 %v1181_v10, %v1192_v14  ;;  %v195_v27 = vsub.f32 %v174_v20, %v194_v22  ;;  %p1022_p0 = pneg %p1021_p13 }
  0x1c   : > { %302 = vmatpush.msrb.mxu0 %v1186_v12  ;;  %v390_v21 = vsub.f32 %v1184_v11, %v1201_v15  ;;  %v527_v34 = vsub.f32 %v506_v32, %v526_v33 }
  0x1d   : > { %355 = vmatpush.msrb.mxu2 %v1169_v5  ;;  %v221_v23 = vand.u32 4294901760, %v220_v17  ;;  %v227_v24 = vand.u32 4294901760, %v226_v18  ;;  %v385_v25 = vand.u32 4294901760, %v384_v19  ;;  %v196_v28 = vand.u32 4294901760, %v195_v27  ;;  %p1027_p5 = pnand %p1026_p3, %p1022_p0 }
  0x1e   : > { %306 = vmatpush.msrb.mxu0 %v1189_v13  ;;  %v391_v26 = vand.u32 4294901760, %v390_v21  ;;  %256 = vmatmul.f32.vlgmr.msra.gmra.mxu2 %v195_v27  ;;  %v528_v35 = vand.u32 4294901760, %v527_v34 }
  0x1f   : > { %357 = vmatpush.msrb.mxu2 %v1174_v7  ;;  %222 = vmatpush.msra.mxu1 %v221_v23  ;;  %v197_v29 = vsub.f32 %v195_v27, %v196_v28 }
  0x20   : > { %386 = vmatpush.msrb.mxu3 %v385_v25  ;;  %v529_v36 = vsub.f32 %v527_v34, %v528_v35 }
  0x21   : > { %228 = vmatpush.msra.mxu1 %v227_v24  ;;  %281 = vmatmul.f32.vlgmr.msra.gmra.mxu3 %v196_v28  ;;  %v198_v30 = vand.u32 4294901760, %v197_v29 }
  0x22   : > { %230 = vmatmul.f32.vlgmr.msra.gmra.mxu1 %v194_v22  ;;  %392 = vmatpush.msrb.mxu3 %v391_v26  ;;  %v530_v37 = vand.u32 4294901760, %v529_v36 }
  0x23   : > { %327 = vmatpush.msrb.mxu1 %v1165_v3  ;;  %466 = vmatpush.msra.mxu2 %v1192_v14 }
  0x24   : > { %491 = vmatpush.msra.mxu3 %v1169_v5  ;;  %199 = vmatmul.f32.vlgmr.msra.gmra.mxu0 %v198_v30 }
  0x25   : > { %329 = vmatpush.msrb.mxu1 %v1167_v4  ;;  %470 = vmatpush.msra.mxu2 %v1201_v15 }
  0x26   : > { %493 = vmatpush.msra.mxu3 %v1174_v7  ;;  %414 = vmatpush.msra.mxu0 %v1181_v10 }
  0x27   : > { %439 = vmatpush.msra.mxu1 %v1169_v5  ;;  %363 = vmatmul.f32.vlgmr.msrb.gmra.mxu2 %v198_v30 }
  0x28   : > { %417 = vmatpush.msra.mxu0 %v1184_v11  ;;  %582 = vmatpush.msrb.mxu2 %v218_v8 }
  0x29   : > { %441 = vmatpush.msra.mxu1 %v1174_v7  ;;  %394 = vmatmul.f32.vlgmr.msrb.gmra.mxu3 %v194_v22 }
  0x2a   : > { %331 = vmatmul.f32.vlgmr.msrb.gmra.mxu1 %v194_v22  ;;  %607 = vmatpush.msrb.mxu3 %v1165_v3 }
  0x2b   : > { %554 = vmatpush.msrb.mxu1 %v221_v23  ;;  %585 = vmatpush.msrb.mxu2 %v224_v9 }
  0x2c   : > { %609 = vmatpush.msrb.mxu3 %v1167_v4  ;;  %308 = vmatmul.f32.vlgmr.msrb.gmra.mxu0 %v194_v22 }
  0x2d   : > { %560 = vmatpush.msrb.mxu1 %v227_v24  ;;  %523 = vmatpush.msrb.mxu0 %v1165_v3 }
  0x2f   : > { %472 = vmatmul.f32.vlgmr.msra.gmra.mxu2 %v194_v22  ;;  %525 = vmatpush.msrb.mxu0 %v1167_v4 }
  0x30   : > { %686 = vmatpush.msra.mxu2 %v1169_v5 }
  0x31   : > { %495 = vmatmul.f32.vlgmr.msra.gmra.mxu3 %v194_v22 }
  0x32   : > { %445 = vmatmul.f32.vlgmr.msra.gmra.mxu1 %v196_v28  ;;  %717 = vmatpush.msra.mxu3 %v385_v25 }
  0x33   : > { %659 = vmatpush.msra.mxu1 %v1165_v3  ;;  %688 = vmatpush.msra.mxu2 %v1174_v7 }
  0x34   : > { %723 = vmatpush.msra.mxu3 %v391_v26  ;;  %420 = vmatmul.f32.vlgmr.msra.gmra.mxu0 %v195_v27 }
  0x35   : > { %661 = vmatpush.msra.mxu1 %v1167_v4  ;;  %634 = vmatpush.msra.mxu0 %v1186_v12 }
  0x37   : > { %588 = vmatmul.f32.vlgmr.msrb.gmra.mxu2 %v527_v34  ;;  %638 = vmatpush.msra.mxu0 %v1189_v13 }
  0x38   : > { %797 = vmatpush.msrb.mxu2 %v1192_v14 }
  0x39   : > { %613 = vmatmul.f32.vlgmr.msrb.gmra.mxu3 %v528_v35 }
  0x3a   : > { %562 = vmatmul.f32.vlgmr.msrb.gmra.mxu1 %v526_v33  ;;  %822 = vmatpush.msrb.mxu3 %v1169_v5 }
  0x3b   : > { %770 = vmatpush.msrb.mxu1 %v1169_v5  ;;  %801 = vmatpush.msrb.mxu2 %v1201_v15 }
  0x3c   : > { %824 = vmatpush.msrb.mxu3 %v1174_v7  ;;  %531 = vmatmul.f32.vlgmr.msrb.gmra.mxu0 %v530_v37 }
  0x3d   : > { %772 = vmatpush.msrb.mxu1 %v1174_v7  ;;  %745 = vmatpush.msrb.mxu0 %v1181_v10 }
  0x3f   : > { %694 = vmatmul.f32.vlgmr.msra.gmra.mxu2 %v530_v37  ;;  %748 = vmatpush.msrb.mxu0 %v1184_v11 }
  0x41   : > { %725 = vmatmul.f32.vlgmr.msra.gmra.mxu3 %v526_v33 }
  0x42   : > { %663 = vmatmul.f32.vlgmr.msra.gmra.mxu1 %v526_v33 }
  0x44   : > { %640 = vmatmul.f32.vlgmr.msra.gmra.mxu0 %v526_v33 }
  0x47   : > { %803 = vmatmul.f32.vlgmr.msrb.gmra.mxu2 %v526_v33 }
  0x49   : > { %826 = vmatmul.f32.vlgmr.msrb.gmra.mxu3 %v526_v33 }
  0x4a   : > { %776 = vmatmul.f32.vlgmr.msrb.gmra.mxu1 %v528_v35 }
  0x4c   : > { %751 = vmatmul.f32.vlgmr.msrb.gmra.mxu0 %v527_v34 }
  0x9f   : > { %v231_v38 = vpop.f32.mrf.mxu1 }
  0xa1   : > { %v200_v39 = vpop.f32.mrf.mxu0  ;;  %v257_v40 = vpop.f32.mrf.mxu2 }
  0xa2   : > { %v232_v41 = vadd.f32 %v231_v38, %v200_v39 }
  0xa4   : > { %v282_v42 = vpop.f32.mrf.mxu3  ;;  %v258_v43 = vadd.f32 %v257_v40, %v232_v41 }
  0xa6   : > { %v283_v45 = vadd.f32 %v282_v42, %v258_v43 }
  0xa7   : > { %v332_v44 = vpop.f32.mrf.mxu1 }
  0xa9   : > { %v309_v46 = vpop.f32.mrf.mxu0 }
  0xaa   : > { %v364_v47 = vpop.f32.mrf.mxu2  ;;  %v310_v48 = vadd.f32 %v309_v46, %v283_v45 }
  0xac   : > { %v395_v49 = vpop.f32.mrf.mxu3  ;;  %v333_v50 = vadd.f32 %v332_v44, %v310_v48 }
  0xad   : > { %v396_v52 = vadd.f32 %v395_v49, %v364_v47 }
  0xae   : > { %336 = vst.msk [vmem:[%s1248_s16] sm:$0xff] %vm335_vm1, %v333_v50 }
  0xaf   : > { %v446_v51 = vpop.f32.mrf.mxu1 }
  0xb1   : > { %v421_v53 = vpop.f32.mrf.mxu0 }
  0xb2   : > { %v473_v54 = vpop.f32.mrf.mxu2  ;;  %v422_v55 = vadd.f32 %v421_v53, %v396_v52 }
  0xb4   : > { %v496_v56 = vpop.f32.mrf.mxu3  ;;  %v447_v57 = vadd.f32 %v446_v51, %v422_v55 }
  0xb6   : > { %v474_v58 = vadd.f32 %v473_v54, %v447_v57 }
  0xb7   : > { %v563_v59 = vpop.f32.mrf.mxu1 }
  0xb8   : > { %v497_v60 = vadd.f32 %v496_v56, %v474_v58 }
  0xb9   : > { %v532_v61 = vpop.f32.mrf.mxu0 }
  0xba   : > { %v589_v62 = vpop.f32.mrf.mxu2  ;;  %934 = vst.msk [vmem:[%s1248_s16 + $0x8] sm:$0xff] %vm335_vm1, %v497_v60  ;;  %v564_v63 = vadd.f32 %v563_v59, %v532_v61 }
  0xbc   : > { %v614_v0 = vpop.f32.mrf.mxu3  ;;  %v590_v1 = vadd.f32 %v589_v62, %v564_v63 }
  0xbe   : > { %v615_v3 = vadd.f32 %v614_v0, %v590_v1 }
  0xbf   : > { %v664_v2 = vpop.f32.mrf.mxu1 }
  0xc1   : > { %v641_v4 = vpop.f32.mrf.mxu0 }
  0xc2   : > { %v695_v5 = vpop.f32.mrf.mxu2  ;;  %v642_v6 = vadd.f32 %v641_v4, %v615_v3 }
  0xc4   : > { %v665_v7 = vadd.f32 %v664_v2, %v642_v6  ;;  %v726_v8 = vpop.f32.mrf.mxu3 }
  0xc5   : > { %v727_v9 = vadd.f32 %v726_v8, %v695_v5 }
  0xc6   : > { %936 = vst.msk [vmem:[%s1248_s16 + $0x10] sm:$0xff] %vm335_vm1, %v665_v7 }
  0xc7   : > { %v777_v11 = vpop.f32.mrf.mxu1 }
  0xc9   : > { %v752_v10 = vpop.f32.mrf.mxu0 }
  0xca   : > { %v753_v12 = vadd.f32 %v752_v10, %v727_v9  ;;  %v804_v13 = vpop.f32.mrf.mxu2 }
  0xcc   : > { %v778_v14 = vadd.f32 %v777_v11, %v753_v12  ;;  %v827_v15 = vpop.f32.mrf.mxu3 }
  0xce   : > { %v805_v16 = vadd.f32 %v804_v13, %v778_v14 }
  0xd0   : > { %v828_v17 = vadd.f32 %v827_v15, %v805_v16 }
  0xd2   : > { %939 = vst.msk [vmem:[%s1248_s16 + $0x18] sm:$0xff] %vm335_vm1, %v828_v17 }
  0xd3   : > { %1030 = shalt.err (!%p1027_p5)
}
  0xd4   : > { %s1083_s6 = smov 128   ;;  %s1084_s7 = smov 8  }
  0xd5   : > { %946 = dma.vmem_to_hbm [thread:$0]  (%p1140_p4), %s847_s25, 512, %s849_s26, %s833_s12, %s1083_s6, %s1083_s6, %s1084_s7  }
  0xd6 PF: > { %p952_p6 = scmp.ge.s32.totalorder %s1081_s14, 2  ;;  %s863_s8 = sand.u32 1, %s1061_s9  }
  0xd7   : > { %s864_s15 = scalar_lea.sflag [#allocation3], %s863_s8 }
  0xd8   : > { %p949_p7 = pnand %p952_p6, %p1147_p8 }
  0xda   : > { %p950_p9 = pneg %p949_p7 }
  0xdc   : > { %1056 = dma.done.wait (%p950_p9), %s864_s15, 512  }
  0xdd   : > { %1058 = vsyncadd (%p950_p9), %s864_s15, 4294966784  ;;  %s15_s14 = sadd.s32 1, %s1081_s14   ;;  %s1302_s9 = smov %s1065_s10 }
  0xde   : > { %p12_p10 = scmp.ge.s32.totalorder %s15_s14, 10   ;;  %s1303_s10 = smov %s1069_s11 }
  0xdf   : > { %s1304_s11 = smov %s1153_s22  ;;  %s1305_s12 = smov %s1077_s13 }
  0xe0   : > { %s1306_s13 = smov %s1308_s17  ;;  %14 = sbr.rel (!%p12_p10) target bundleno = 4 (0x4), region = 68 }
  0xe5   :  { %870 = vsyncpa [#allocation3], 1 }
  0xe6   :  { %872 = vsyncpa [#allocation3 + $0x1], 1 }

</bundles_post_ra>
